<compile_context>
chip_gen: v5e
topology: v5e:2x2
jax: 0.10.0
libtpu: 0.0.40
codegen_flags: <defaults>
</compile_context>

<pallas_src>
import functools

import jax
import jax.numpy as jnp
from jax.experimental import pallas as pl
from jax.experimental.pallas import tpu as pltpu


# ----------------------------------------------------------------------------
# Fused kernel: all GATConv layers + ELU + log_softmax in one program.
# ----------------------------------------------------------------------------
def _gat_fused_kernel(layer_cfgs, x_ref, adj_ref, *refs):
    """refs = (w_comb_0, bias_0, w_comb_1, bias_1, ..., out_ref)

    w_comb_l : [Fin_l, H*Fout + 2*H]
        cols [0, H*Fout)             per-head projection weights (head-major)
        cols [H*Fout, H*Fout+H)      W[h] @ a_src[h]  (source attention folded in)
        cols [H*Fout+H, H*Fout+2H)   W[h] @ a_dst[h]  (dest attention folded in)
    bias_l   : [1, H*Fout]
    """
    out_ref = refs[-1]
    param_refs = refs[:-1]

    adj = adj_ref[...].astype(jnp.float32)          # [N_dst, N_src], 0/1 mask
    h = x_ref[...].astype(jnp.float32)              # [N, Fin]

    for li, (heads, fout) in enumerate(layer_cfgs):
        w = param_refs[2 * li][...]                 # [Fin, H*Fout + 2H]
        b = param_refs[2 * li + 1][...]             # [1, H*Fout]
        hf = heads * fout

        # Single MXU matmul: projected features + both attention scores.
        z = jnp.dot(h, w, preferred_element_type=jnp.float32)    # [N, HF + 2H]
        feats = z[:, :hf]                                         # [N, H*Fout]
        s_src_cols = z[:, hf:hf + heads]                          # [N, H]
        s_dst_cols = z[:, hf + heads:hf + 2 * heads]              # [N, H]
        s_src_rows = s_src_cols.T                                 # [H, N]  (tiny transpose)

        head_outs = []
        for hd in range(heads):
            hh = feats[:, hd * fout:(hd + 1) * fout]              # [N, Fout]
            # e[dst, src] = s_dst[dst] + s_src[src]
            e = s_dst_cols[:, hd:hd + 1] + s_src_rows[hd:hd + 1, :]   # [N, N]
            e = jnp.where(e > 0, e, 0.2 * e)                      # LeakyReLU(0.2)
            # Masked softmax over incoming edges (src axis). Unmasked row-max is
            # a valid stabilizer; the mask is applied post-exp (adj is 0/1 and
            # self-loops guarantee >=1 edge per row).
            e_max = jnp.max(e, axis=-1, keepdims=True)
            p = jnp.exp(e - e_max) * adj
            denom = jnp.sum(p, axis=-1, keepdims=True)
            attn = p * pl.reciprocal(denom, approx=True)
            head_outs.append(
                jnp.dot(attn, hh, preferred_element_type=jnp.float32))  # [N, Fout]

        y = head_outs[0] if heads == 1 else jnp.concatenate(head_outs, axis=-1)
        y = y + b                                                 # [N, H*Fout]
        # F.elu applied after every GATConv (matches GAT.forward, incl. last layer)
        h = jnp.where(y > 0, y, jnp.exp(jnp.minimum(y, 0.0)) - 1.0)

    # F.log_softmax(x, dim=1)
    m = jnp.max(h, axis=-1, keepdims=True)
    s = h - m
    lse = jnp.log(jnp.sum(jnp.exp(s), axis=-1, keepdims=True))
    out_ref[...] = (s - lse).astype(out_ref.dtype)


# ----------------------------------------------------------------------------
# Wrapper: fold per-head params into one combined weight matrix per layer and
# launch a single pallas_call for the whole forward pass.
# ----------------------------------------------------------------------------
def _fold_layer_params(w, a_src, a_dst, bias):
    heads, fin, fout = w.shape
    # [H, Fin, Fout] -> [Fin, H*Fout]  (head-major column order, matches concat)
    w_all = jnp.transpose(w, (1, 0, 2)).reshape(fin, heads * fout)
    # Fold attention vectors into extra matmul columns: col h = W[h] @ a_src[h]
    w_src = jnp.einsum("hif,hf->ih", w, a_src[:, 0, :])           # [Fin, H]
    w_dst = jnp.einsum("hif,hf->ih", w, a_dst[:, 0, :])           # [Fin, H]
    w_comb = jnp.concatenate([w_all, w_src, w_dst], axis=1)       # [Fin, H*Fout+2H]
    b_all = bias[:, 0, :].reshape(1, heads * fout)                # [1, H*Fout]
    return w_comb, b_all


@jax.jit
def gat_forward(x, adj, params):
    n = x.shape[0]
    layer_cfgs = []
    flat = [x, adj]
    for (w, a_src, a_dst, bias) in params:
        heads, _, fout = w.shape
        w_comb, b_all = _fold_layer_params(w, a_src, a_dst, bias)
        flat += [w_comb, b_all]
        layer_cfgs.append((heads, fout))
    num_classes = layer_cfgs[-1][0] * layer_cfgs[-1][1]

    # All arrays are 2-D and tiny: one full-array VMEM block each, single grid step.
    in_specs = [pl.BlockSpec(a.shape, lambda i: (0, 0)) for a in flat]
    kernel = functools.partial(_gat_fused_kernel, tuple(layer_cfgs))
    return pl.pallas_call(
        kernel,
        out_shape=jax.ShapeDtypeStruct((n, num_classes), jnp.float32),
        grid=(1,),
        in_specs=in_specs,
        out_specs=pl.BlockSpec((n, num_classes), lambda i: (0, 0)),
        compiler_params=pltpu.CompilerParams(dimension_semantics=("arbitrary",)),
    )(*flat)


# ----------------------------------------------------------------------------
# Pure-JAX reference (for correctness check only)
# ----------------------------------------------------------------------------
def _reference_forward(x, adj, params):
    h = x
    for (w, a_src, a_dst, bias) in params:
        heads, _, fout = w.shape
        hp = jnp.einsum("nf,hfo->hno", h, w)                      # [H, N, Fout]
        s_src = jnp.sum(hp * a_src, axis=-1)                      # [H, N]
        s_dst = jnp.sum(hp * a_dst, axis=-1)                      # [H, N]
        e = s_dst[:, :, None] + s_src[:, None, :]                 # [H, dst, src]
        e = jnp.where(e > 0, e, 0.2 * e)
        e = jnp.where(adj[None] > 0, e, -1e30)
        attn = jax.nn.softmax(e, axis=-1)
        out = jnp.einsum("hds,hsf->hdf", attn, hp) + bias         # [H, N, Fout]
        out = jnp.transpose(out, (1, 0, 2)).reshape(h.shape[0], heads * fout)
        h = jax.nn.elu(out)
    return jax.nn.log_softmax(h, axis=-1)


def init_gat_conv_params(key, fin, fout, heads):
    k1, k2, k3 = jax.random.split(key, 3)
    scale = 1.0 / jnp.sqrt(jnp.float32(fin))
    w = jax.random.normal(k1, (heads, fin, fout), jnp.float32) * scale
    a_src = jax.random.normal(k2, (heads, 1, fout), jnp.float32) * 0.1
    a_dst = jax.random.normal(k3, (heads, 1, fout), jnp.float32) * 0.1
    bias = jnp.zeros((heads, 1, fout), jnp.float32)
    return (w, a_src, a_dst, bias)


if __name__ == "__main__":
    # Small synthetic "dataset"/"args": num_features=8, attention_out_channels=8,
    # multi_head=2, num_classes=4, number_layers=3, N=16 nodes.
    # TODO(synk): F.dropout / GATConv attention dropout are training-only (identity in eval) and are omitted.
    N = 16
    NUM_FEATURES = 8
    OUT_CHANNELS = 8
    MULTI_HEAD = 2
    NUM_CLASSES = 4
    NUM_EDGES = 48

    key = jax.random.PRNGKey(0)
    kx, ke1, ke2, kp0, kp1, kp2 = jax.random.split(key, 6)

    x = jax.random.normal(kx, (N, NUM_FEATURES), jnp.float32)

    # edge_index -> dense adjacency mask adj[dst, src], plus self-loops
    src = jax.random.randint(ke1, (NUM_EDGES,), 0, N)
    dst = jax.random.randint(ke2, (NUM_EDGES,), 0, N)
    adj = jnp.zeros((N, N), jnp.float32).at[dst, src].set(1.0)
    adj = jnp.maximum(adj, jnp.eye(N, dtype=jnp.float32))

    params = [
        init_gat_conv_params(kp0, NUM_FEATURES, OUT_CHANNELS, MULTI_HEAD),
        init_gat_conv_params(kp1, OUT_CHANNELS * MULTI_HEAD, OUT_CHANNELS, MULTI_HEAD),
        init_gat_conv_params(kp2, OUT_CHANNELS * MULTI_HEAD, NUM_CLASSES, 1),
    ]

    out = gat_forward(x, adj, params)
    out = jax.block_until_ready(out)
    assert out.shape == (N, NUM_CLASSES)
    # log_softmax rows must exponentiate-sum to ~1
    assert jnp.allclose(jnp.sum(jnp.exp(out), axis=1), 1.0, atol=1e-4)
    # check against pure-JAX reference (loose tol: approx reciprocal in kernel)
    ref = _reference_forward(x, adj, params)
    assert jnp.allclose(out, ref, atol=1e-2, rtol=1e-2)
    print("KERNEL_OK")
</pallas_src>

<mosaic_0001>
module attributes {stable_mosaic.version = 11 : i64} {
  func.func @_gat_fused_kernel(%arg0: i32, %arg1: memref<16x8xf32, #tpu.memory_space<vmem>>, %arg2: memref<16x16xf32, #tpu.memory_space<vmem>>, %arg3: memref<8x20xf32, #tpu.memory_space<vmem>>, %arg4: memref<1x16xf32, #tpu.memory_space<vmem>>, %arg5: memref<16x20xf32, #tpu.memory_space<vmem>>, %arg6: memref<1x16xf32, #tpu.memory_space<vmem>>, %arg7: memref<16x6xf32, #tpu.memory_space<vmem>>, %arg8: memref<1x4xf32, #tpu.memory_space<vmem>>, %arg9: memref<16x4xf32, #tpu.memory_space<vmem>>) attributes {dimension_semantics = [#tpu.dimension_semantics<arbitrary>], iteration_bounds = array<i64: 1>, scalar_prefetch = 0 : i64, scratch_operands = 0 : i64, tpu.core_type = #tpu.core_type<tc>, window_params = [{pipeline_mode = #tpu.pipeline_mode<synchronous>, transform_indices = @transform_0, window_bounds = array<i64: 16, 8>}, {pipeline_mode = #tpu.pipeline_mode<synchronous>, transform_indices = @transform_1, window_bounds = array<i64: 16, 16>}, {pipeline_mode = #tpu.pipeline_mode<synchronous>, transform_indices = @transform_2, window_bounds = array<i64: 8, 20>}, {pipeline_mode = #tpu.pipeline_mode<synchronous>, transform_indices = @transform_3, window_bounds = array<i64: 1, 16>}, {pipeline_mode = #tpu.pipeline_mode<synchronous>, transform_indices = @transform_4, window_bounds = array<i64: 16, 20>}, {pipeline_mode = #tpu.pipeline_mode<synchronous>, transform_indices = @transform_5, window_bounds = array<i64: 1, 16>}, {pipeline_mode = #tpu.pipeline_mode<synchronous>, transform_indices = @transform_6, window_bounds = array<i64: 16, 6>}, {pipeline_mode = #tpu.pipeline_mode<synchronous>, transform_indices = @transform_7, window_bounds = array<i64: 1, 4>}, {pipeline_mode = #tpu.pipeline_mode<synchronous>, transform_indices = @transform_8, window_bounds = array<i64: 16, 4>}]} {
    %c0 = arith.constant 0 : index
    %c0_0 = arith.constant 0 : index
    %0 = vector.load %arg2[%c0, %c0_0] : memref<16x16xf32, #tpu.memory_space<vmem>>, vector<16x16xf32>
    %c0_1 = arith.constant 0 : index
    %c0_2 = arith.constant 0 : index
    %1 = vector.load %arg1[%c0_1, %c0_2] : memref<16x8xf32, #tpu.memory_space<vmem>>, vector<16x8xf32>
    %c0_3 = arith.constant 0 : index
    %c0_4 = arith.constant 0 : index
    %2 = vector.load %arg3[%c0_3, %c0_4] : memref<8x20xf32, #tpu.memory_space<vmem>>, vector<8x20xf32>
    %c0_5 = arith.constant 0 : index
    %c0_6 = arith.constant 0 : index
    %3 = vector.load %arg4[%c0_5, %c0_6] : memref<1x16xf32, #tpu.memory_space<vmem>>, vector<1x16xf32>
    %cst = arith.constant dense<0.000000e+00> : vector<16x20xf32>
    %4 = tpu.matmul %1, %2, %cst {dimension_numbers = #tpu.dot_dimension_numbers<[1], [0], [0], [1], [0, 0, 1, 1], [], []>} : vector<16x8xf32>, vector<8x20xf32>, vector<16x20xf32> -> vector<16x20xf32>
    %5 = vector.extract_strided_slice %4 {offsets = [0, 0], sizes = [16, 16], strides = [1, 1]} : vector<16x20xf32> to vector<16x16xf32>
    %6 = vector.extract_strided_slice %4 {offsets = [0, 16], sizes = [16, 2], strides = [1, 1]} : vector<16x20xf32> to vector<16x2xf32>
    %7 = vector.extract_strided_slice %4 {offsets = [0, 18], sizes = [16, 2], strides = [1, 1]} : vector<16x20xf32> to vector<16x2xf32>
    %8 = tpu.transpose %6, [1, 0] : vector<16x2xf32> -> vector<2x16xf32>
    %9 = vector.extract_strided_slice %5 {offsets = [0, 0], sizes = [16, 8], strides = [1, 1]} : vector<16x16xf32> to vector<16x8xf32>
    %10 = vector.extract_strided_slice %7 {offsets = [0, 0], sizes = [16, 1], strides = [1, 1]} : vector<16x2xf32> to vector<16x1xf32>
    %11 = vector.extract_strided_slice %8 {offsets = [0, 0], sizes = [1, 16], strides = [1, 1]} : vector<2x16xf32> to vector<1x16xf32>
    %12 = vector.broadcast %10 : vector<16x1xf32> to vector<16x16xf32>
    %13 = vector.broadcast %11 : vector<1x16xf32> to vector<16x16xf32>
    %14 = arith.addf %12, %13 : vector<16x16xf32>
    %cst_7 = arith.constant 0.000000e+00 : f32
    %15 = vector.broadcast %cst_7 : f32 to vector<16x16xf32>
    %16 = arith.cmpf ogt, %14, %15 : vector<16x16xf32>
    %cst_8 = arith.constant 2.000000e-01 : f32
    %17 = vector.broadcast %cst_8 : f32 to vector<16x16xf32>
    %18 = arith.mulf %17, %14 : vector<16x16xf32>
    %19 = arith.select %16, %14, %18 : vector<16x16xi1>, vector<16x16xf32>
    %cst_9 = arith.constant dense<0xFF800000> : vector<16xf32>
    %20 = vector.multi_reduction <maximumf>, %19, %cst_9 [1] : vector<16x16xf32> to vector<16xf32>
    %21 = vector.shape_cast %20 : vector<16xf32> to vector<16x1xf32>
    %22 = vector.broadcast %21 : vector<16x1xf32> to vector<16x16xf32>
    %23 = arith.subf %19, %22 : vector<16x16xf32>
    %24 = math.exp %23 : vector<16x16xf32>
    %25 = arith.mulf %24, %0 : vector<16x16xf32>
    %cst_10 = arith.constant dense<0.000000e+00> : vector<16xf32>
    %26 = vector.multi_reduction <add>, %25, %cst_10 [1] : vector<16x16xf32> to vector<16xf32>
    %27 = vector.shape_cast %26 : vector<16xf32> to vector<16x1xf32>
    %28 = tpu.reciprocal %27 {approx = true} : vector<16x1xf32> -> vector<16x1xf32>
    %29 = vector.broadcast %28 : vector<16x1xf32> to vector<16x16xf32>
    %30 = arith.mulf %25, %29 : vector<16x16xf32>
    %cst_11 = arith.constant dense<0.000000e+00> : vector<16x8xf32>
    %31 = tpu.matmul %30, %9, %cst_11 {dimension_numbers = #tpu.dot_dimension_numbers<[1], [0], [0], [1], [0, 0, 1, 1], [], []>} : vector<16x16xf32>, vector<16x8xf32>, vector<16x8xf32> -> vector<16x8xf32>
    %32 = vector.extract_strided_slice %5 {offsets = [0, 8], sizes = [16, 8], strides = [1, 1]} : vector<16x16xf32> to vector<16x8xf32>
    %33 = vector.extract_strided_slice %7 {offsets = [0, 1], sizes = [16, 1], strides = [1, 1]} : vector<16x2xf32> to vector<16x1xf32>
    %34 = vector.extract_strided_slice %8 {offsets = [1, 0], sizes = [1, 16], strides = [1, 1]} : vector<2x16xf32> to vector<1x16xf32>
    %35 = vector.broadcast %33 : vector<16x1xf32> to vector<16x16xf32>
    %36 = vector.broadcast %34 : vector<1x16xf32> to vector<16x16xf32>
    %37 = arith.addf %35, %36 : vector<16x16xf32>
    %cst_12 = arith.constant 0.000000e+00 : f32
    %38 = vector.broadcast %cst_12 : f32 to vector<16x16xf32>
    %39 = arith.cmpf ogt, %37, %38 : vector<16x16xf32>
    %cst_13 = arith.constant 2.000000e-01 : f32
    %40 = vector.broadcast %cst_13 : f32 to vector<16x16xf32>
    %41 = arith.mulf %40, %37 : vector<16x16xf32>
    %42 = arith.select %39, %37, %41 : vector<16x16xi1>, vector<16x16xf32>
    %cst_14 = arith.constant dense<0xFF800000> : vector<16xf32>
    %43 = vector.multi_reduction <maximumf>, %42, %cst_14 [1] : vector<16x16xf32> to vector<16xf32>
    %44 = vector.shape_cast %43 : vector<16xf32> to vector<16x1xf32>
    %45 = vector.broadcast %44 : vector<16x1xf32> to vector<16x16xf32>
    %46 = arith.subf %42, %45 : vector<16x16xf32>
    %47 = math.exp %46 : vector<16x16xf32>
    %48 = arith.mulf %47, %0 : vector<16x16xf32>
    %cst_15 = arith.constant dense<0.000000e+00> : vector<16xf32>
    %49 = vector.multi_reduction <add>, %48, %cst_15 [1] : vector<16x16xf32> to vector<16xf32>
    %50 = vector.shape_cast %49 : vector<16xf32> to vector<16x1xf32>
    %51 = tpu.reciprocal %50 {approx = true} : vector<16x1xf32> -> vector<16x1xf32>
    %52 = vector.broadcast %51 : vector<16x1xf32> to vector<16x16xf32>
    %53 = arith.mulf %48, %52 : vector<16x16xf32>
    %cst_16 = arith.constant dense<0.000000e+00> : vector<16x8xf32>
    %54 = tpu.matmul %53, %32, %cst_16 {dimension_numbers = #tpu.dot_dimension_numbers<[1], [0], [0], [1], [0, 0, 1, 1], [], []>} : vector<16x16xf32>, vector<16x8xf32>, vector<16x8xf32> -> vector<16x8xf32>
    %55 = tpu.concatenate %31, %54 in 1 : vector<16x8xf32>, vector<16x8xf32> -> vector<16x16xf32>
    %56 = vector.broadcast %3 : vector<1x16xf32> to vector<16x16xf32>
    %57 = arith.addf %55, %56 : vector<16x16xf32>
    %cst_17 = arith.constant 0.000000e+00 : f32
    %58 = vector.broadcast %cst_17 : f32 to vector<16x16xf32>
    %59 = arith.cmpf ogt, %57, %58 : vector<16x16xf32>
    %cst_18 = arith.constant 0.000000e+00 : f32
    %60 = vector.broadcast %cst_18 : f32 to vector<16x16xf32>
    %61 = arith.minimumf %57, %60 : vector<16x16xf32>
    %62 = math.exp %61 : vector<16x16xf32>
    %cst_19 = arith.constant 1.000000e+00 : f32
    %63 = vector.broadcast %cst_19 : f32 to vector<16x16xf32>
    %64 = arith.subf %62, %63 : vector<16x16xf32>
    %65 = arith.select %59, %57, %64 : vector<16x16xi1>, vector<16x16xf32>
    %c0_20 = arith.constant 0 : index
    %c0_21 = arith.constant 0 : index
    %66 = vector.load %arg5[%c0_20, %c0_21] : memref<16x20xf32, #tpu.memory_space<vmem>>, vector<16x20xf32>
    %c0_22 = arith.constant 0 : index
    %c0_23 = arith.constant 0 : index
    %67 = vector.load %arg6[%c0_22, %c0_23] : memref<1x16xf32, #tpu.memory_space<vmem>>, vector<1x16xf32>
    %cst_24 = arith.constant dense<0.000000e+00> : vector<16x20xf32>
    %68 = tpu.matmul %65, %66, %cst_24 {dimension_numbers = #tpu.dot_dimension_numbers<[1], [0], [0], [1], [0, 0, 1, 1], [], []>} : vector<16x16xf32>, vector<16x20xf32>, vector<16x20xf32> -> vector<16x20xf32>
    %69 = vector.extract_strided_slice %68 {offsets = [0, 0], sizes = [16, 16], strides = [1, 1]} : vector<16x20xf32> to vector<16x16xf32>
    %70 = vector.extract_strided_slice %68 {offsets = [0, 16], sizes = [16, 2], strides = [1, 1]} : vector<16x20xf32> to vector<16x2xf32>
    %71 = vector.extract_strided_slice %68 {offsets = [0, 18], sizes = [16, 2], strides = [1, 1]} : vector<16x20xf32> to vector<16x2xf32>
    %72 = tpu.transpose %70, [1, 0] : vector<16x2xf32> -> vector<2x16xf32>
    %73 = vector.extract_strided_slice %69 {offsets = [0, 0], sizes = [16, 8], strides = [1, 1]} : vector<16x16xf32> to vector<16x8xf32>
    %74 = vector.extract_strided_slice %71 {offsets = [0, 0], sizes = [16, 1], strides = [1, 1]} : vector<16x2xf32> to vector<16x1xf32>
    %75 = vector.extract_strided_slice %72 {offsets = [0, 0], sizes = [1, 16], strides = [1, 1]} : vector<2x16xf32> to vector<1x16xf32>
    %76 = vector.broadcast %74 : vector<16x1xf32> to vector<16x16xf32>
    %77 = vector.broadcast %75 : vector<1x16xf32> to vector<16x16xf32>
    %78 = arith.addf %76, %77 : vector<16x16xf32>
    %cst_25 = arith.constant 0.000000e+00 : f32
    %79 = vector.broadcast %cst_25 : f32 to vector<16x16xf32>
    %80 = arith.cmpf ogt, %78, %79 : vector<16x16xf32>
    %cst_26 = arith.constant 2.000000e-01 : f32
    %81 = vector.broadcast %cst_26 : f32 to vector<16x16xf32>
    %82 = arith.mulf %81, %78 : vector<16x16xf32>
    %83 = arith.select %80, %78, %82 : vector<16x16xi1>, vector<16x16xf32>
    %cst_27 = arith.constant dense<0xFF800000> : vector<16xf32>
    %84 = vector.multi_reduction <maximumf>, %83, %cst_27 [1] : vector<16x16xf32> to vector<16xf32>
    %85 = vector.shape_cast %84 : vector<16xf32> to vector<16x1xf32>
    %86 = vector.broadcast %85 : vector<16x1xf32> to vector<16x16xf32>
    %87 = arith.subf %83, %86 : vector<16x16xf32>
    %88 = math.exp %87 : vector<16x16xf32>
    %89 = arith.mulf %88, %0 : vector<16x16xf32>
    %cst_28 = arith.constant dense<0.000000e+00> : vector<16xf32>
    %90 = vector.multi_reduction <add>, %89, %cst_28 [1] : vector<16x16xf32> to vector<16xf32>
    %91 = vector.shape_cast %90 : vector<16xf32> to vector<16x1xf32>
    %92 = tpu.reciprocal %91 {approx = true} : vector<16x1xf32> -> vector<16x1xf32>
    %93 = vector.broadcast %92 : vector<16x1xf32> to vector<16x16xf32>
    %94 = arith.mulf %89, %93 : vector<16x16xf32>
    %cst_29 = arith.constant dense<0.000000e+00> : vector<16x8xf32>
    %95 = tpu.matmul %94, %73, %cst_29 {dimension_numbers = #tpu.dot_dimension_numbers<[1], [0], [0], [1], [0, 0, 1, 1], [], []>} : vector<16x16xf32>, vector<16x8xf32>, vector<16x8xf32> -> vector<16x8xf32>
    %96 = vector.extract_strided_slice %69 {offsets = [0, 8], sizes = [16, 8], strides = [1, 1]} : vector<16x16xf32> to vector<16x8xf32>
    %97 = vector.extract_strided_slice %71 {offsets = [0, 1], sizes = [16, 1], strides = [1, 1]} : vector<16x2xf32> to vector<16x1xf32>
    %98 = vector.extract_strided_slice %72 {offsets = [1, 0], sizes = [1, 16], strides = [1, 1]} : vector<2x16xf32> to vector<1x16xf32>
    %99 = vector.broadcast %97 : vector<16x1xf32> to vector<16x16xf32>
    %100 = vector.broadcast %98 : vector<1x16xf32> to vector<16x16xf32>
    %101 = arith.addf %99, %100 : vector<16x16xf32>
    %cst_30 = arith.constant 0.000000e+00 : f32
    %102 = vector.broadcast %cst_30 : f32 to vector<16x16xf32>
    %103 = arith.cmpf ogt, %101, %102 : vector<16x16xf32>
    %cst_31 = arith.constant 2.000000e-01 : f32
    %104 = vector.broadcast %cst_31 : f32 to vector<16x16xf32>
    %105 = arith.mulf %104, %101 : vector<16x16xf32>
    %106 = arith.select %103, %101, %105 : vector<16x16xi1>, vector<16x16xf32>
    %cst_32 = arith.constant dense<0xFF800000> : vector<16xf32>
    %107 = vector.multi_reduction <maximumf>, %106, %cst_32 [1] : vector<16x16xf32> to vector<16xf32>
    %108 = vector.shape_cast %107 : vector<16xf32> to vector<16x1xf32>
    %109 = vector.broadcast %108 : vector<16x1xf32> to vector<16x16xf32>
    %110 = arith.subf %106, %109 : vector<16x16xf32>
    %111 = math.exp %110 : vector<16x16xf32>
    %112 = arith.mulf %111, %0 : vector<16x16xf32>
    %cst_33 = arith.constant dense<0.000000e+00> : vector<16xf32>
    %113 = vector.multi_reduction <add>, %112, %cst_33 [1] : vector<16x16xf32> to vector<16xf32>
    %114 = vector.shape_cast %113 : vector<16xf32> to vector<16x1xf32>
    %115 = tpu.reciprocal %114 {approx = true} : vector<16x1xf32> -> vector<16x1xf32>
    %116 = vector.broadcast %115 : vector<16x1xf32> to vector<16x16xf32>
    %117 = arith.mulf %112, %116 : vector<16x16xf32>
    %cst_34 = arith.constant dense<0.000000e+00> : vector<16x8xf32>
    %118 = tpu.matmul %117, %96, %cst_34 {dimension_numbers = #tpu.dot_dimension_numbers<[1], [0], [0], [1], [0, 0, 1, 1], [], []>} : vector<16x16xf32>, vector<16x8xf32>, vector<16x8xf32> -> vector<16x8xf32>
    %119 = tpu.concatenate %95, %118 in 1 : vector<16x8xf32>, vector<16x8xf32> -> vector<16x16xf32>
    %120 = vector.broadcast %67 : vector<1x16xf32> to vector<16x16xf32>
    %121 = arith.addf %119, %120 : vector<16x16xf32>
    %cst_35 = arith.constant 0.000000e+00 : f32
    %122 = vector.broadcast %cst_35 : f32 to vector<16x16xf32>
    %123 = arith.cmpf ogt, %121, %122 : vector<16x16xf32>
    %cst_36 = arith.constant 0.000000e+00 : f32
    %124 = vector.broadcast %cst_36 : f32 to vector<16x16xf32>
    %125 = arith.minimumf %121, %124 : vector<16x16xf32>
    %126 = math.exp %125 : vector<16x16xf32>
    %cst_37 = arith.constant 1.000000e+00 : f32
    %127 = vector.broadcast %cst_37 : f32 to vector<16x16xf32>
    %128 = arith.subf %126, %127 : vector<16x16xf32>
    %129 = arith.select %123, %121, %128 : vector<16x16xi1>, vector<16x16xf32>
    %c0_38 = arith.constant 0 : index
    %c0_39 = arith.constant 0 : index
    %130 = vector.load %arg7[%c0_38, %c0_39] : memref<16x6xf32, #tpu.memory_space<vmem>>, vector<16x6xf32>
    %c0_40 = arith.constant 0 : index
    %c0_41 = arith.constant 0 : index
    %131 = vector.load %arg8[%c0_40, %c0_41] : memref<1x4xf32, #tpu.memory_space<vmem>>, vector<1x4xf32>
    %cst_42 = arith.constant dense<0.000000e+00> : vector<16x6xf32>
    %132 = tpu.matmul %129, %130, %cst_42 {dimension_numbers = #tpu.dot_dimension_numbers<[1], [0], [0], [1], [0, 0, 1, 1], [], []>} : vector<16x16xf32>, vector<16x6xf32>, vector<16x6xf32> -> vector<16x6xf32>
    %133 = vector.extract_strided_slice %132 {offsets = [0, 0], sizes = [16, 4], strides = [1, 1]} : vector<16x6xf32> to vector<16x4xf32>
    %134 = vector.extract_strided_slice %132 {offsets = [0, 4], sizes = [16, 1], strides = [1, 1]} : vector<16x6xf32> to vector<16x1xf32>
    %135 = vector.extract_strided_slice %132 {offsets = [0, 5], sizes = [16, 1], strides = [1, 1]} : vector<16x6xf32> to vector<16x1xf32>
    %136 = tpu.transpose %134, [1, 0] : vector<16x1xf32> -> vector<1x16xf32>
    %137 = vector.broadcast %135 : vector<16x1xf32> to vector<16x16xf32>
    %138 = vector.broadcast %136 : vector<1x16xf32> to vector<16x16xf32>
    %139 = arith.addf %137, %138 : vector<16x16xf32>
    %cst_43 = arith.constant 0.000000e+00 : f32
    %140 = vector.broadcast %cst_43 : f32 to vector<16x16xf32>
    %141 = arith.cmpf ogt, %139, %140 : vector<16x16xf32>
    %cst_44 = arith.constant 2.000000e-01 : f32
    %142 = vector.broadcast %cst_44 : f32 to vector<16x16xf32>
    %143 = arith.mulf %142, %139 : vector<16x16xf32>
    %144 = arith.select %141, %139, %143 : vector<16x16xi1>, vector<16x16xf32>
    %cst_45 = arith.constant dense<0xFF800000> : vector<16xf32>
    %145 = vector.multi_reduction <maximumf>, %144, %cst_45 [1] : vector<16x16xf32> to vector<16xf32>
    %146 = vector.shape_cast %145 : vector<16xf32> to vector<16x1xf32>
    %147 = vector.broadcast %146 : vector<16x1xf32> to vector<16x16xf32>
    %148 = arith.subf %144, %147 : vector<16x16xf32>
    %149 = math.exp %148 : vector<16x16xf32>
    %150 = arith.mulf %149, %0 : vector<16x16xf32>
    %cst_46 = arith.constant dense<0.000000e+00> : vector<16xf32>
    %151 = vector.multi_reduction <add>, %150, %cst_46 [1] : vector<16x16xf32> to vector<16xf32>
    %152 = vector.shape_cast %151 : vector<16xf32> to vector<16x1xf32>
    %153 = tpu.reciprocal %152 {approx = true} : vector<16x1xf32> -> vector<16x1xf32>
    %154 = vector.broadcast %153 : vector<16x1xf32> to vector<16x16xf32>
    %155 = arith.mulf %150, %154 : vector<16x16xf32>
    %cst_47 = arith.constant dense<0.000000e+00> : vector<16x4xf32>
    %156 = tpu.matmul %155, %133, %cst_47 {dimension_numbers = #tpu.dot_dimension_numbers<[1], [0], [0], [1], [0, 0, 1, 1], [], []>} : vector<16x16xf32>, vector<16x4xf32>, vector<16x4xf32> -> vector<16x4xf32>
    %157 = vector.broadcast %131 : vector<1x4xf32> to vector<16x4xf32>
    %158 = arith.addf %156, %157 : vector<16x4xf32>
    %cst_48 = arith.constant 0.000000e+00 : f32
    %159 = vector.broadcast %cst_48 : f32 to vector<16x4xf32>
    %160 = arith.cmpf ogt, %158, %159 : vector<16x4xf32>
    %cst_49 = arith.constant 0.000000e+00 : f32
    %161 = vector.broadcast %cst_49 : f32 to vector<16x4xf32>
    %162 = arith.minimumf %158, %161 : vector<16x4xf32>
    %163 = math.exp %162 : vector<16x4xf32>
    %cst_50 = arith.constant 1.000000e+00 : f32
    %164 = vector.broadcast %cst_50 : f32 to vector<16x4xf32>
    %165 = arith.subf %163, %164 : vector<16x4xf32>
    %166 = arith.select %160, %158, %165 : vector<16x4xi1>, vector<16x4xf32>
    %cst_51 = arith.constant dense<0xFF800000> : vector<16xf32>
    %167 = vector.multi_reduction <maximumf>, %166, %cst_51 [1] : vector<16x4xf32> to vector<16xf32>
    %168 = vector.shape_cast %167 : vector<16xf32> to vector<16x1xf32>
    %169 = vector.broadcast %168 : vector<16x1xf32> to vector<16x4xf32>
    %170 = arith.subf %166, %169 : vector<16x4xf32>
    %171 = math.exp %170 : vector<16x4xf32>
    %cst_52 = arith.constant dense<0.000000e+00> : vector<16xf32>
    %172 = vector.multi_reduction <add>, %171, %cst_52 [1] : vector<16x4xf32> to vector<16xf32>
    %173 = vector.shape_cast %172 : vector<16xf32> to vector<16x1xf32>
    %174 = math.log %173 : vector<16x1xf32>
    %175 = vector.broadcast %174 : vector<16x1xf32> to vector<16x4xf32>
    %176 = arith.subf %170, %175 : vector<16x4xf32>
    %c0_53 = arith.constant 0 : index
    %c0_54 = arith.constant 0 : index
    %177 = vector.load %arg9[%c0_53, %c0_54] : memref<16x4xf32, #tpu.memory_space<vmem>>, vector<16x4xf32>
    tpu.vector_store %arg9[%c0_53, %c0_54], %176 {strides = array<i32>} : memref<16x4xf32, #tpu.memory_space<vmem>>, vector<16x4xf32>,
    return
  }
  func.func @transform_0(%arg0: i32) -> (i32, i32) {
    %c0_i32 = arith.constant 0 : i32
    %c0_i32_0 = arith.constant 0 : i32
    %c0_i32_1 = arith.constant 0 : i32
    return %c0_i32, %c0_i32_0 : i32, i32
  }
  func.func @transform_1(%arg0: i32) -> (i32, i32) {
    %c0_i32 = arith.constant 0 : i32
    %c0_i32_0 = arith.constant 0 : i32
    %c0_i32_1 = arith.constant 0 : i32
    return %c0_i32, %c0_i32_0 : i32, i32
  }
  func.func @transform_2(%arg0: i32) -> (i32, i32) {
    %c0_i32 = arith.constant 0 : i32
    %c0_i32_0 = arith.constant 0 : i32
    %c0_i32_1 = arith.constant 0 : i32
    return %c0_i32, %c0_i32_0 : i32, i32
  }
  func.func @transform_3(%arg0: i32) -> (i32, i32) {
    %c0_i32 = arith.constant 0 : i32
    %c0_i32_0 = arith.constant 0 : i32
    %c0_i32_1 = arith.constant 0 : i32
    return %c0_i32, %c0_i32_0 : i32, i32
  }
  func.func @transform_4(%arg0: i32) -> (i32, i32) {
    %c0_i32 = arith.constant 0 : i32
    %c0_i32_0 = arith.constant 0 : i32
    %c0_i32_1 = arith.constant 0 : i32
    return %c0_i32, %c0_i32_0 : i32, i32
  }
  func.func @transform_5(%arg0: i32) -> (i32, i32) {
    %c0_i32 = arith.constant 0 : i32
    %c0_i32_0 = arith.constant 0 : i32
    %c0_i32_1 = arith.constant 0 : i32
    return %c0_i32, %c0_i32_0 : i32, i32
  }
  func.func @transform_6(%arg0: i32) -> (i32, i32) {
    %c0_i32 = arith.constant 0 : i32
    %c0_i32_0 = arith.constant 0 : i32
    %c0_i32_1 = arith.constant 0 : i32
    return %c0_i32, %c0_i32_0 : i32, i32
  }
  func.func @transform_7(%arg0: i32) -> (i32, i32) {
    %c0_i32 = arith.constant 0 : i32
    %c0_i32_0 = arith.constant 0 : i32
    %c0_i32_1 = arith.constant 0 : i32
    return %c0_i32, %c0_i32_0 : i32, i32
  }
  func.func @transform_8(%arg0: i32) -> (i32, i32) {
    %c0_i32 = arith.constant 0 : i32
    %c0_i32_0 = arith.constant 0 : i32
    %c0_i32_1 = arith.constant 0 : i32
    return %c0_i32, %c0_i32_0 : i32, i32
  }
}

</mosaic_0001>

<bundles_post_ra>
// kernel: squeeze.11
= control target key start
LH: loop header
LB: loop body
LE: loop exit
PB: predicated region body
PF: predicated region fallthrough
CT: control target
= control target key end

     0   :  { %vm7_vm0 = vcmask 64512   ;;  %vm13_vm1 = vcmask 130112   ;;  %s39_s0 = inlined_call_operand.vmem [shape: f32[2,8], index: 0, kind: input, shape index: {}]   ;;  %s40_s1 = inlined_call_operand.vmem [shape: f32[1,16], index: 1, kind: output, shape index: {}]  }
   0x1   :  { %v4_v0 = vld [vmem:[%s39_s0] sm:$0x3]  ;;  %s22_s0 = smov 8  }
   0x2   :  { %5 = vst [vmem:[#allocation1] sm:$0x3] %v4_v0 }
   0x9   :  { %v10_v1 = vld [vmem:[#allocation1 + $0x1] sm:$0x1]   ;;  %v6_v2 = vld [vmem:[#allocation1] sm:$0x1]  }
   0xa   :  { %11 = vrot.lane.b32.xlu0 %v10_v1, %s22_s0  ;;  %8 = vst.msk [vmem:[#allocation0] sm:$0x1] %vm7_vm0, %v6_v2  }
  0x7c   :  { %v12_v3 = vpop.permute.xlu0 %11  }
  0x7d   :  { %14 = vst.msk [vmem:[#allocation0] sm:$0x1] %vm13_vm1, %v12_v3  }
  0x84   :  { %v17_v4 = vld [vmem:[#allocation0] sm:$0x1] }
  0x85   :  { %20 = vst [vmem:[%s40_s1] sm:$0x1] %v17_v4 }

// kernel: gat_forward.1
= control target key start
LH: loop header
LB: loop body
LE: loop exit
PB: predicated region body
PF: predicated region fallthrough
CT: control target
= control target key end

     0   :  { %vm35_vm0 = vcmask 64512   ;;  %v823_v2 = vmov 19   ;;  %v824_v4 = vmov 18   ;;  %vm122_vm1 = vcmask 130048   ;;  %s990_s2 = inlined_call_operand.vmem [shape: f32[8,20], index: 2, kind: input, shape index: {}]   ;;  %s991_s0 = inlined_call_operand.vmem [shape: f32[16,8], index: 0, kind: input, shape index: {}]   ;;  %s992_s1 = inlined_call_operand.vmem [shape: f32[16,16], index: 1, kind: input, shape index: {}]   ;;  %s993_s3 = inlined_call_operand.vmem [shape: f32[1,16], index: 3, kind: input, shape index: {}]   ;;  %s994_s4 = inlined_call_operand.vmem [shape: f32[16,20], index: 4, kind: input, shape index: {}]   ;;  %s995_s5 = inlined_call_operand.vmem [shape: f32[1,16], index: 5, kind: input, shape index: {}]   ;;  %s996_s6 = inlined_call_operand.vmem [shape: f32[16,6], index: 6, kind: input, shape index: {}]   ;;  %s997_s7 = inlined_call_operand.vmem [shape: f32[1,4], index: 7, kind: input, shape index: {}]   ;;  %s998_s8 = inlined_call_operand.vmem [shape: f32[16,4], index: 8, kind: output, shape index: {}]  }
   0x1   :  { %v33_v0 = vld [vmem:[%s990_s2] sm:$0xff]  ;;  %742 = vset.pattern.permute.xlu1 %v823_v2  ;;  %v32_v3 = vld [vmem:[%s991_s0 + $0x8] sm:$0xff]  ;;  %743 = vset.pattern.permute.xlu0 %v824_v4  ;;  %s825_s2 = smov 112  }
   0x2   :  { %v31_v1 = vld [vmem:[%s991_s0] sm:$0xff]  ;;  %57 = vmatpush.msra.mxu0 %v33_v0  ;;  %s826_s0 = smov 120   ;;  %v905_v47 = vld [vmem:[%s992_s1 + $0x8] sm:$0xff] }
   0x3   :  { %712 = vmatmul.msk.f32.vlgmr.msra.gmra.mxu0 %vm35_vm0, %v31_v1  ;;  %v898_v41 = vld [vmem:[%s992_s1] sm:$0xff]  ;;  %s827_s1 = smov 8  }
   0xb   :  { %713 = vmatmul.msk.f32.gmra.mxu0 %vm35_vm0, %v32_v3 }
  0x80   :  { %v59_v5 = vpop.f32.mrf.mxu0 }
  0x81   :  { %177 = vperm.xlu1 %742, %v59_v5   ;;  %67 = vrot.lane.b32.xlu0 %v59_v5, %s825_s2 }
  0x88   :  { %v62_v6 = vpop.f32.mrf.mxu0 }
  0x89   :  { %181 = vperm.xlu1 %742, %v62_v6   ;;  %69 = vrot.lane.b32.xlu0 %v62_v6, %s825_s2  ;;  %v745_v32 = vpack.i.bf16 %v59_v5, %v62_v6 }
  0x8a   :  { %167 = vmatpush.msra.mxu1 %v62_v6 }
  0x8c   :  { %168 = vmatpush.msra.mxu1 %v59_v5 }
  0x91   :  { %106 = vperm.xlu0 %743, %v59_v5  }
  0xf3   :  { %v68_v7 = vpop.permute.xlu0 %67  ;;  %v178_v9 = vpop.permute.xlu1 %177 }
  0xf4   :  { %73 = vxpose.xlu2.b32.start [1/2] (short) (narrow) %v68_v7, 8 }
  0xfb   :  { %v70_v8 = vpop.permute.xlu0 %69  ;;  %v182_v13 = vpop.permute.xlu1 %181 }
  0xfc   :  { %74 = vxpose.xlu2.b32.end [2/2] (short) (narrow) %v70_v8, 8 }
 0x103   :  { %v107_v14 = vpop.permute.xlu0 %106 }
 0x15e   :  { %744 = vset.pattern.permute.xlu2 %v824_v4 }
 0x165   :  { %110 = vperm.xlu2 %744, %v62_v6  }
 0x16d   :  { %750 = vset.pattern.permute.xlu2 %v823_v2 }
 0x18d   :  { %v89_v10 = vpop.trf.xlu2 }
 0x18e   :  { %v113_v11 = vperm.slane %v89_v10, 0  ;;  %v184_v12 = vperm.slane %v89_v10, 1 }
 0x190   :  { %v185_v15 = vadd.f32 %v184_v12, %v178_v9  ;;  %v186_v16 = vadd.f32 %v184_v12, %v182_v13  ;;  %v114_v17 = vadd.f32 %v113_v11, %v107_v14  ;;  %v280_v13 = vld [vmem:[%s994_s4 + $0x8] sm:$0xff]  ;;  %v279_v14 = vld [vmem:[%s994_s4] sm:$0xff] }
 0x191   :  { %302 = vmatpush.msra.mxu3 %v280_v13 }
 0x192   :  { %vm188_vm2 = vcmp.gt.f32.partialorder %v186_v16, 0.0  ;;  %v190_v18 = vmul.f32 0.2, %v186_v16  ;;  %vm187_vm3 = vcmp.gt.f32.partialorder %v185_v15, 0.0  ;;  %v189_v19 = vmul.f32 0.2, %v185_v15 }
 0x193   :  { %v118_v24 = vmul.f32 0.2, %v114_v17  ;;  %vm116_vm4 = vcmp.gt.f32.partialorder %v114_v17, 0.0  ;;  %303 = vmatpush.msra.mxu3 %v279_v14 }
 0x194   :  { %v192_v20 = vsel %vm188_vm2, %v186_v16, %v190_v18  ;;  %v191_v21 = vsel %vm187_vm3, %v185_v15, %v189_v19  ;;  %v760_v15 = vld [vmem:[%s993_s3] ss:$0 sm:$0xff] }
 0x195   :  { %v196_v22 = vsel %vm122_vm1, %v192_v20, -inf  ;;  %v193_v23 = vsel %vm122_vm1, %v191_v21, -inf  ;;  %v120_v25 = vsel %vm116_vm4, %v114_v17, %v118_v24 }
 0x196   :  { %197 = vmax.xlane.f32.xlu0 %v196_v22  ;;  %194 = vmax.xlane.f32.xlu1 %v193_v23  ;;  %v123_v26 = vsel %vm122_vm1, %v120_v25, -inf }
 0x19e   :  { %124 = vmax.xlane.f32.xlu1 %v123_v26 }
 0x1bf   :  { %v111_v27 = vpop.permute.xlu2 %110 }
 0x1c0   :  { %v115_v28 = vadd.f32 %v113_v11, %v111_v27 }
 0x1c2   :  { %v119_v29 = vmul.f32 0.2, %v115_v28  ;;  %vm117_vm5 = vcmp.gt.f32.partialorder %v115_v28, 0.0 }
 0x1c4   :  { %v121_v30 = vsel %vm117_vm5, %v115_v28, %v119_v29 }
 0x1c5   :  { %v126_v31 = vsel %vm122_vm1, %v121_v30, -inf }
 0x1c6   :  { %127 = vmax.xlane.f32.xlu1 %v126_v31 }
 0x1df   :  { %746 = vrot.lane.b32.xlu1 %v745_v32, %s826_s0 }
 0x209   :  { %v195_v33 = vpop.xlane.xlu1 %194  ;;  %v198_v34 = vpop.xlane.xlu0 %197 }
 0x20a   :  { %v199_v35 = vsub.f32 %v191_v21, %v195_v33  ;;  %v200_v36 = vsub.f32 %v192_v20, %v198_v34 }
 0x20c   :  { %v201_v37 = vmul.f32 1.442695, %v199_v35  ;;  %v203_v38 = vmul.f32 1.442695, %v200_v36 }
 0x20e   :  { %763 = vpow2.f32 %v201_v37 }
 0x20f   :  { %765 = vpow2.f32 %v203_v38 }
 0x211   :  { %v125_v39 = vpop.xlane.xlu1 %124 }
 0x212   :  { %v129_v40 = vsub.f32 %v120_v25, %v125_v39 }
 0x214   :  { %v764_v42 = vpop.eup %763  ;;  %v131_v44 = vmul.f32 1.442695, %v129_v40 }
 0x215   :  { %v205_v43 = vmul.f32 %v764_v42, %v898_v41  ;;  %v766_v46 = vpop.eup %765 }
 0x216   :  { %767 = vpow2.f32 %v131_v44  ;;  %v206_v48 = vmul.f32 %v766_v46, %v905_v47 }
 0x217   :  { %v207_v45 = vsel %vm122_vm1, %v205_v43, 0.0 }
 0x218   :  { %208 = vadd.xlane.f32.xlu0 %v207_v45  ;;  %v210_v49 = vsel %vm122_vm1, %v206_v48, 0.0 }
 0x21c   :  { %v768_v50 = vpop.eup %767 }
 0x21d   :  { %v135_v51 = vmul.f32 %v768_v50, %v898_v41 }
 0x21f   :  { %v137_v52 = vsel %vm122_vm1, %v135_v51, 0.0 }
 0x220   :  { %211 = vadd.xlane.f32.xlu0 %v210_v49 }
 0x228   :  { %138 = vadd.xlane.f32.xlu0 %v137_v52 }
 0x239   :  { %v128_v53 = vpop.xlane.xlu1 %127 }
 0x23a   :  { %v130_v54 = vsub.f32 %v121_v30, %v128_v53 }
 0x23c   :  { %v133_v55 = vmul.f32 1.442695, %v130_v54 }
 0x23e   :  { %769 = vpow2.f32 %v133_v55 }
 0x244   :  { %v770_v56 = vpop.eup %769 }
 0x245   :  { %v136_v57 = vmul.f32 %v770_v56, %v905_v47 }
 0x247   :  { %v140_v58 = vsel %vm122_vm1, %v136_v57, 0.0 }
 0x248   :  { %141 = vadd.xlane.f32.xlu0 %v140_v58 }
 0x251   :  { %v747_v59 = vpop.permute.xlu1 %746 }
 0x252   :  { %v748_v60 = vunpack.i.l.bf16 %v747_v59  ;;  %v749_v61 = vunpack.i.h.bf16 %v747_v59 }
 0x254   :  { %243 = vmatpush.msra.mxu2 %v748_v60 }
 0x256   :  { %244 = vmatpush.msra.mxu2 %v749_v61 }
 0x28b   :  { %v209_v62 = vpop.xlane.xlu0 %208 }
 0x28c   :  { %771 = vrcp.f32 %v209_v62 }
 0x292   :  { %v772_v63 = vpop.eup %771 }
 0x293   :  { %v212_v0 = vpop.xlane.xlu0 %211  ;;  %v215_v1 = vmul.f32 %v772_v63, %v205_v43 }
 0x294   :  { %773 = vrcp.f32 %v212_v0 }
 0x295   :  { %716 = vmatmul.msk.f32.vlgmr.msra.gmra.mxu2 %vm122_vm1, %v215_v1 }
 0x29a   :  { %v774_v2 = vpop.eup %773 }
 0x29b   :  { %v139_v3 = vpop.xlane.xlu0 %138  ;;  %v216_v5 = vmul.f32 %v774_v2, %v206_v48 }
 0x29c   :  { %775 = vrcp.f32 %v139_v3 }
 0x29d   :  { %717 = vmatmul.msk.f32.gmra.mxu2 %vm122_vm1, %v216_v5 }
 0x2a2   :  { %v776_v6 = vpop.eup %775 }
 0x2a3   :  { %v145_v7 = vmul.f32 %v776_v6, %v135_v51 }
 0x2a5   :  { %714 = vmatmul.msk.f32.vlgmr.msra.gmra.mxu1 %vm122_vm1, %v145_v7 }
 0x2bb   :  { %v142_v8 = vpop.xlane.xlu0 %141 }
 0x2bc   :  { %777 = vrcp.f32 %v142_v8 }
 0x2c2   :  { %v778_v9 = vpop.eup %777 }
 0x2c3   :  { %v146_v10 = vmul.f32 %v778_v9, %v136_v57 }
 0x2c5   :  { %715 = vmatmul.msk.f32.gmra.mxu1 %vm122_vm1, %v146_v10 }
 0x318   :  { %v246_v11 = vpop.f32.mrf.mxu2 }
 0x319   :  { %254 = vrot.lane.b32.xlu1 %v246_v11, %s827_s1 }
 0x320   :  { %v249_v12 = vpop.f32.mrf.mxu2 }
 0x321   :  { %256 = vrot.lane.b32.xlu0 %v249_v12, %s827_s1 }
 0x322   :  { %v170_v16 = vpop.f32.mrf.mxu1 }
 0x342   :  { %v173_v22 = vpop.f32.mrf.mxu1 }
 0x38b   :  { %v255_v17 = vpop.permute.xlu1 %254 }
 0x38c   :  { %v260_v18 = vsel %vm35_vm0, %v170_v16, %v255_v17 }
 0x38d   :  { %v265_v19 = vadd.f32 %v760_v15, %v260_v18 }
 0x38f   :  { %v269_v20 = vmin.f32 %v265_v19, 0.0  ;;  %vm267_vm6 = vcmp.gt.f32.partialorder %v265_v19, 0.0 }
 0x391   :  { %v271_v21 = vmul.f32 1.442695, %v269_v20 }
 0x393   :  { %v257_v23 = vpop.permute.xlu0 %256  ;;  %779 = vpow2.f32 %v271_v21 }
 0x394   :  { %v261_v24 = vsel %vm35_vm0, %v173_v22, %v257_v23 }
 0x395   :  { %v266_v25 = vadd.f32 %v760_v15, %v261_v24 }
 0x397   :  { %v270_v26 = vmin.f32 %v266_v25, 0.0  ;;  %vm268_vm7 = vcmp.gt.f32.partialorder %v266_v25, 0.0 }
 0x399   :  { %v780_v27 = vpop.eup %779  ;;  %v273_v28 = vmul.f32 1.442695, %v270_v26 }
 0x39a   :  { %v718_v29 = vadd.f32 -1.0, %v780_v27 }
 0x39b   :  { %781 = vpow2.f32 %v273_v28 }
 0x39c   :  { %v277_v30 = vsel %vm267_vm6, %v265_v19, %v718_v29 }
 0x39d   :  { %720 = vmatmul.msk.f32.vlgmr.msra.gmra.mxu3 %vm122_vm1, %v277_v30 }
 0x3a1   :  { %v782_v31 = vpop.eup %781 }
 0x3a2   :  { %v719_v32 = vadd.f32 -1.0, %v782_v31 }
 0x3a4   :  { %v278_v33 = vsel %vm268_vm7, %v266_v25, %v719_v32 }
 0x3a5   :  { %721 = vmatmul.msk.f32.gmra.mxu3 %vm122_vm1, %v278_v33 }
 0x420   :  { %v305_v34 = vpop.f32.mrf.mxu3 }
 0x421   :  { %422 = vperm.xlu2 %750, %v305_v34   ;;  %313 = vrot.lane.b32.xlu1 %v305_v34, %s825_s2 }
 0x428   :  { %v308_v35 = vpop.f32.mrf.mxu3 }
 0x429   :  { %751 = vset.pattern.permute.xlu2 %v824_v4  ;;  %315 = vrot.lane.b32.xlu1 %v308_v35, %s825_s2  ;;  %v752_v62 = vpack.i.bf16 %v305_v34, %v308_v35 }
 0x42a   :  { %412 = vmatpush.msrb.mxu0 %v308_v35  ;;  %352 = vperm.xlu2 %751, %v305_v34  }
 0x42c   :  { %413 = vmatpush.msrb.mxu0 %v305_v34 }
 0x431   :  { %426 = vperm.xlu1 %742, %v308_v35  }
 0x432   :  { %356 = vperm.xlu2 %751, %v308_v35  }
 0x47b   :  { %v423_v38 = vpop.permute.xlu2 %422 }
 0x484   :  { %v353_v39 = vpop.permute.xlu2 %352 }
 0x48c   :  { %v357_v45 = vpop.permute.xlu2 %356 }
 0x493   :  { %v314_v36 = vpop.permute.xlu1 %313 }
 0x494   :  { %319 = vxpose.xlu0.b32.start [1/2] (short) (narrow) %v314_v36, 8 }
 0x49b   :  { %v316_v37 = vpop.permute.xlu1 %315 }
 0x49c   :  { %320 = vxpose.xlu0.b32.end [2/2] (short) (narrow) %v316_v37, 8 }
 0x4a3   :  { %v427_v44 = vpop.permute.xlu1 %426 }
 0x538   :  { %v335_v40 = vpop.trf.xlu0 }
 0x539   :  { %v359_v42 = vperm.slane %v335_v40, 0  ;;  %v429_v43 = vperm.slane %v335_v40, 1 }
 0x53b   :  { %v360_v46 = vadd.f32 %v359_v42, %v353_v39  ;;  %v430_v4 = vadd.f32 %v429_v43, %v423_v38  ;;  %v431_v48 = vadd.f32 %v429_v43, %v427_v44  ;;  %v361_v49 = vadd.f32 %v359_v42, %v357_v45  ;;  %v525_v42 = vld [vmem:[%s996_s6 + $0x8] sm:$0xff]  ;;  %v524_v43 = vld [vmem:[%s996_s6] sm:$0xff] }
 0x53c   :  { %547 = vmatpush.msrb.mxu2 %v525_v42  ;;  %v761_v44 = vld [vmem:[%s995_s5] ss:$0 sm:$0xff]  ;;  %s829_s5 = smov 124  }
 0x53d   :  { %vm432_vm8 = vcmp.gt.f32.partialorder %v430_v4, 0.0  ;;  %v434_v50 = vmul.f32 0.2, %v430_v4  ;;  %vm362_vm9 = vcmp.gt.f32.partialorder %v360_v46, 0.0  ;;  %v364_v51 = vmul.f32 0.2, %v360_v46 }
 0x53e   :  { %vm433_vm10 = vcmp.gt.f32.partialorder %v431_v48, 0.0  ;;  %v435_v52 = vmul.f32 0.2, %v431_v48  ;;  %v365_v59 = vmul.f32 0.2, %v361_v49  ;;  %vm363_vm11 = vcmp.gt.f32.partialorder %v361_v49, 0.0  ;;  %548 = vmatpush.msrb.mxu2 %v524_v43 }
 0x53f   :  { %v436_v53 = vsel %vm432_vm8, %v430_v4, %v434_v50  ;;  %v366_v54 = vsel %vm362_vm9, %v360_v46, %v364_v51 }
 0x540   :  { %v438_v55 = vsel %vm122_vm1, %v436_v53, -inf  ;;  %v368_v56 = vsel %vm122_vm1, %v366_v54, -inf  ;;  %v437_v57 = vsel %vm433_vm10, %v431_v48, %v435_v52  ;;  %v367_v60 = vsel %vm363_vm11, %v361_v49, %v365_v59 }
 0x541   :  { %439 = vmax.xlane.f32.xlu1 %v438_v55  ;;  %369 = vmax.xlane.f32.xlu0 %v368_v56  ;;  %v441_v58 = vsel %vm122_vm1, %v437_v57, -inf  ;;  %v371_v61 = vsel %vm122_vm1, %v367_v60, -inf }
 0x542   :  { %442 = vmax.xlane.f32.xlu2 %v441_v58 }
 0x549   :  { %372 = vmax.xlane.f32.xlu1 %v371_v61 }
 0x55a   :  { %753 = vrot.lane.b32.xlu2 %v752_v62, %s826_s0 }
 0x5b4   :  { %v440_v63 = vpop.xlane.xlu1 %439  ;;  %v370_v6 = vpop.xlane.xlu0 %369 }
 0x5b5   :  { %v443_v0 = vpop.xlane.xlu2 %442  ;;  %v444_v1 = vsub.f32 %v436_v53, %v440_v63  ;;  %v374_v9 = vsub.f32 %v366_v54, %v370_v6  ;;  %v828_v63 = vmov 5  }
 0x5b6   :  { %v445_v2 = vsub.f32 %v437_v57, %v443_v0  ;;  %757 = vset.pattern.permute.xlu2 %v828_v63  ;;  %758 = vset.pattern.permute.xlu1 %v828_v63 }
 0x5b7   :  { %v446_v3 = vmul.f32 1.442695, %v444_v1  ;;  %v376_v13 = vmul.f32 1.442695, %v374_v9  ;;  %759 = vset.pattern.permute.xlu0 %v828_v63 }
 0x5b8   :  { %v448_v5 = vmul.f32 1.442695, %v445_v2 }
 0x5b9   :  { %783 = vpow2.f32 %v446_v3 }
 0x5ba   :  { %785 = vpow2.f32 %v448_v5 }
 0x5bb   :  { %787 = vpow2.f32 %v376_v13 }
 0x5bc   :  { %v373_v14 = vpop.xlane.xlu1 %372 }
 0x5bd   :  { %v754_v7 = vpop.permute.xlu2 %753  ;;  %v375_v17 = vsub.f32 %v367_v60, %v373_v14 }
 0x5be   :  { %v755_v8 = vunpack.i.l.bf16 %v754_v7  ;;  %v756_v10 = vunpack.i.h.bf16 %v754_v7 }
 0x5bf   :  { %v784_v11 = vpop.eup %783  ;;  %v378_v19 = vmul.f32 1.442695, %v375_v17 }
 0x5c0   :  { %488 = vmatpush.msrb.mxu1 %v755_v8  ;;  %v450_v12 = vmul.f32 %v784_v11, %v898_v41  ;;  %v786_v16 = vpop.eup %785 }
 0x5c1   :  { %v451_v18 = vmul.f32 %v786_v16, %v905_v47  ;;  %v788_v21 = vpop.eup %787  ;;  %789 = vpow2.f32 %v378_v19 }
 0x5c2   :  { %489 = vmatpush.msrb.mxu1 %v756_v10  ;;  %v452_v15 = vsel %vm122_vm1, %v450_v12, 0.0  ;;  %v380_v22 = vmul.f32 %v788_v21, %v898_v41 }
 0x5c3   :  { %453 = vadd.xlane.f32.xlu1 %v452_v15  ;;  %v455_v20 = vsel %vm122_vm1, %v451_v18, 0.0 }
 0x5c4   :  { %v382_v23 = vsel %vm122_vm1, %v380_v22, 0.0 }
 0x5c7   :  { %v790_v24 = vpop.eup %789 }
 0x5c8   :  { %v381_v25 = vmul.f32 %v790_v24, %v905_v47 }
 0x5ca   :  { %v385_v26 = vsel %vm122_vm1, %v381_v25, 0.0 }
 0x5cb   :  { %456 = vadd.xlane.f32.xlu1 %v455_v20 }
 0x5d3   :  { %383 = vadd.xlane.f32.xlu1 %v382_v23 }
 0x5db   :  { %386 = vadd.xlane.f32.xlu1 %v385_v26 }
 0x636   :  { %v454_v27 = vpop.xlane.xlu1 %453 }
 0x637   :  { %791 = vrcp.f32 %v454_v27 }
 0x63d   :  { %v792_v28 = vpop.eup %791 }
 0x63e   :  { %v457_v29 = vpop.xlane.xlu1 %456  ;;  %v460_v30 = vmul.f32 %v792_v28, %v450_v12 }
 0x63f   :  { %793 = vrcp.f32 %v457_v29 }
 0x640   :  { %724 = vmatmul.msk.f32.vlgmr.msrb.gmra.mxu1 %vm122_vm1, %v460_v30 }
 0x645   :  { %v794_v31 = vpop.eup %793 }
 0x646   :  { %v384_v32 = vpop.xlane.xlu1 %383  ;;  %v461_v33 = vmul.f32 %v794_v31, %v451_v18 }
 0x647   :  { %795 = vrcp.f32 %v384_v32 }
 0x648   :  { %725 = vmatmul.msk.f32.gmra.mxu1 %vm122_vm1, %v461_v33 }
 0x64d   :  { %v796_v34 = vpop.eup %795 }
 0x64e   :  { %v387_v35 = vpop.xlane.xlu1 %386  ;;  %v390_v36 = vmul.f32 %v796_v34, %v380_v22 }
 0x64f   :  { %797 = vrcp.f32 %v387_v35 }
 0x650   :  { %722 = vmatmul.msk.f32.vlgmr.msrb.gmra.mxu0 %vm122_vm1, %v390_v36 }
 0x655   :  { %v798_v37 = vpop.eup %797 }
 0x656   :  { %v391_v38 = vmul.f32 %v798_v37, %v381_v25 }
 0x658   :  { %723 = vmatmul.msk.f32.gmra.mxu0 %vm122_vm1, %v391_v38 }
 0x6bd   :  { %v491_v39 = vpop.f32.mrf.mxu1 }
 0x6be   :  { %499 = vrot.lane.b32.xlu2 %v491_v39, %s827_s1 }
 0x6c5   :  { %v494_v40 = vpop.f32.mrf.mxu1 }
 0x6c6   :  { %501 = vrot.lane.b32.xlu1 %v494_v40, %s827_s1 }
 0x6cd   :  { %v415_v45 = vpop.f32.mrf.mxu0 }
 0x6d5   :  { %v418_v54 = vpop.f32.mrf.mxu0 }
 0x718   :  { %v500_v46 = vpop.permute.xlu2 %499 }
 0x719   :  { %v505_v4 = vsel %vm35_vm0, %v415_v45, %v500_v46 }
 0x71a   :  { %v510_v48 = vadd.f32 %v761_v44, %v505_v4 }
 0x71c   :  { %v514_v49 = vmin.f32 %v510_v48, 0.0  ;;  %vm512_vm12 = vcmp.gt.f32.partialorder %v510_v48, 0.0 }
 0x71e   :  { %v516_v50 = vmul.f32 1.442695, %v514_v49 }
 0x720   :  { %799 = vpow2.f32 %v516_v50 }
 0x726   :  { %v800_v51 = vpop.eup %799 }
 0x727   :  { %v726_v52 = vadd.f32 -1.0, %v800_v51 }
 0x729   :  { %v522_v53 = vsel %vm512_vm12, %v510_v48, %v726_v52 }
 0x72a   :  { %728 = vmatmul.msk.f32.vlgmr.msrb.gmra.mxu2 %vm122_vm1, %v522_v53 }
 0x738   :  { %v502_v55 = vpop.permute.xlu1 %501 }
 0x739   :  { %v506_v56 = vsel %vm35_vm0, %v418_v54, %v502_v55  ;;  %vm681_vm0 = vcmask 31744  }
 0x73a   :  { %v511_v57 = vadd.f32 %v761_v44, %v506_v56 }
 0x73c   :  { %v515_v58 = vmin.f32 %v511_v57, 0.0  ;;  %vm513_vm13 = vcmp.gt.f32.partialorder %v511_v57, 0.0 }
 0x73e   :  { %v518_v59 = vmul.f32 1.442695, %v515_v58 }
 0x740   :  { %801 = vpow2.f32 %v518_v59 }
 0x746   :  { %v802_v60 = vpop.eup %801 }
 0x747   :  { %v727_v61 = vadd.f32 -1.0, %v802_v60 }
 0x749   :  { %v523_v62 = vsel %vm513_vm13, %v511_v57, %v727_v61 }
 0x74a   :  { %729 = vmatmul.msk.f32.gmra.mxu2 %vm122_vm1, %v523_v62 }
 0x7ad   :  { %v550_v0 = vpop.f32.mrf.mxu2 }
 0x7ae   :  { %558 = vrot.lane.b32.xlu2 %v550_v0, %s829_s5 }
 0x7b6   :  { %597 = vperm.xlu2 %757, %v550_v0  }
 0x7cd   :  { %v553_v1 = vpop.f32.mrf.mxu2 }
 0x7ce   :  { %601 = vperm.xlu1 %758, %v553_v1   ;;  %560 = vrot.lane.b32.xlu2 %v553_v1, %s829_s5 }
 0x7cf   :  { %660 = vmatpush.msrb.mxu3 %v553_v1 }
 0x7d1   :  { %661 = vmatpush.msrb.mxu3 %v550_v0 }
 0x808   :  { %v559_v2 = vpop.permute.xlu2 %558 }
 0x809   :  { %564 = vxpose.xlu2.b32.start [1/2] (short) (narrow) %v559_v2, 8 }
 0x810   :  { %v598_v3 = vpop.permute.xlu2 %597 }
 0x828   :  { %v561_v5 = vpop.permute.xlu2 %560 }
 0x829   :  { %565 = vxpose.xlu2.b32.end [2/2] (short) (narrow) %v561_v5, 8 }
 0x840   :  { %v602_v8 = vpop.permute.xlu1 %601 }
 0x8ba   :  { %v580_v6 = vpop.trf.xlu2 }
 0x8bb   :  { %v604_v7 = vperm.slane %v580_v6, 0 }
 0x8bd   :  { %v605_v9 = vadd.f32 %v604_v7, %v598_v3  ;;  %v606_v10 = vadd.f32 %v604_v7, %v602_v8 }
 0x8bf   :  { %vm608_vm14 = vcmp.gt.f32.partialorder %v606_v10, 0.0  ;;  %v610_v11 = vmul.f32 0.2, %v606_v10  ;;  %vm607_vm15 = vcmp.gt.f32.partialorder %v605_v9, 0.0  ;;  %v609_v12 = vmul.f32 0.2, %v605_v9 }
 0x8c1   :  { %v612_v13 = vsel %vm608_vm14, %v606_v10, %v610_v11  ;;  %v611_v14 = vsel %vm607_vm15, %v605_v9, %v609_v12 }
 0x8c2   :  { %v616_v15 = vsel %vm122_vm1, %v612_v13, -inf  ;;  %v613_v16 = vsel %vm122_vm1, %v611_v14, -inf }
 0x8c3   :  { %617 = vmax.xlane.f32.xlu0 %v616_v15  ;;  %614 = vmax.xlane.f32.xlu1 %v613_v16 }
 0x936   :  { %v618_v17 = vpop.xlane.xlu0 %617  ;;  %v615_v18 = vpop.xlane.xlu1 %614 }
 0x937   :  { %v620_v19 = vsub.f32 %v612_v13, %v618_v17  ;;  %v619_v20 = vsub.f32 %v611_v14, %v615_v18 }
 0x939   :  { %v623_v21 = vmul.f32 1.442695, %v620_v19  ;;  %v621_v22 = vmul.f32 1.442695, %v619_v20 }
 0x93b   :  { %803 = vpow2.f32 %v623_v21 }
 0x93c   :  { %805 = vpow2.f32 %v621_v22 }
 0x941   :  { %v804_v23 = vpop.eup %803 }
 0x942   :  { %v806_v24 = vpop.eup %805  ;;  %v626_v25 = vmul.f32 %v804_v23, %v905_v47 }
 0x943   :  { %v625_v26 = vmul.f32 %v806_v24, %v898_v41  ;;  %v762_v41 = vld [vmem:[%s997_s7] ss:$0 sm:$0xff] }
 0x944   :  { %v630_v27 = vsel %vm122_vm1, %v626_v25, 0.0 }
 0x945   :  { %631 = vadd.xlane.f32.xlu2 %v630_v27  ;;  %v627_v28 = vsel %vm122_vm1, %v625_v26, 0.0 }
 0x946   :  { %628 = vadd.xlane.f32.xlu1 %v627_v28 }
 0x9b8   :  { %v632_v30 = vpop.xlane.xlu2 %631 }
 0x9b9   :  { %v629_v29 = vpop.xlane.xlu1 %628 }
 0x9ba   :  { %807 = vrcp.f32 %v629_v29 }
 0x9bb   :  { %809 = vrcp.f32 %v632_v30 }
 0x9c0   :  { %v808_v31 = vpop.eup %807 }
 0x9c1   :  { %v635_v32 = vmul.f32 %v808_v31, %v625_v26  ;;  %v810_v33 = vpop.eup %809 }
 0x9c2   :  { %v636_v34 = vmul.f32 %v810_v33, %v626_v25 }
 0x9c3   :  { %730 = vmatmul.msk.f32.vlgmr.msrb.gmra.mxu3 %vm122_vm1, %v635_v32 }
 0x9cb   :  { %731 = vmatmul.msk.f32.gmra.mxu3 %vm122_vm1, %v636_v34 }
 0xa46   :  { %v663_v47 = vpop.f32.mrf.mxu3 }
 0xa47   :  { %v664_v35 = vadd.f32 %v762_v41, %v663_v47 }
 0xa49   :  { %v671_v36 = vmin.f32 %v664_v35, 0.0  ;;  %vm669_vm2 = vcmp.gt.f32.partialorder %v664_v35, 0.0 }
 0xa4b   :  { %v673_v37 = vmul.f32 1.442695, %v671_v36 }
 0xa4d   :  { %811 = vpow2.f32 %v673_v37 }
 0xa4e   :  { %v666_v38 = vpop.f32.mrf.mxu3 }
 0xa4f   :  { %v667_v39 = vadd.f32 %v762_v41, %v666_v38 }
 0xa51   :  { %v672_v40 = vmin.f32 %v667_v39, 0.0  ;;  %vm670_vm1 = vcmp.gt.f32.partialorder %v667_v39, 0.0 }
 0xa53   :  { %v812_v42 = vpop.eup %811  ;;  %v675_v43 = vmul.f32 1.442695, %v672_v40 }
 0xa54   :  { %v732_v44 = vadd.f32 -1.0, %v812_v42 }
 0xa55   :  { %813 = vpow2.f32 %v675_v43 }
 0xa56   :  { %v679_v45 = vsel %vm669_vm2, %v664_v35, %v732_v44 }
 0xa57   :  { %v682_v46 = vsel %vm681_vm0, %v679_v45, -inf }
 0xa58   :  { %683 = vmax.xlane.f32.xlu0 %v682_v46 }
 0xa5b   :  { %v814_v4 = vpop.eup %813 }
 0xa5c   :  { %v733_v48 = vadd.f32 -1.0, %v814_v4 }
 0xa5e   :  { %v680_v49 = vsel %vm670_vm1, %v667_v39, %v733_v48 }
 0xa5f   :  { %v685_v50 = vsel %vm681_vm0, %v680_v49, -inf }
 0xa60   :  { %686 = vmax.xlane.f32.xlu1 %v685_v50 }
 0xacb   :  { %v684_v51 = vpop.xlane.xlu0 %683 }
 0xacc   :  { %v688_v52 = vsub.f32 %v679_v45, %v684_v51 }
 0xace   :  { %v690_v53 = vmul.f32 1.442695, %v688_v52 }
 0xad0   :  { %815 = vpow2.f32 %v690_v53 }
 0xad3   :  { %v687_v54 = vpop.xlane.xlu1 %686 }
 0xad4   :  { %v689_v55 = vsub.f32 %v680_v49, %v687_v54 }
 0xad6   :  { %v816_v56 = vpop.eup %815  ;;  %v692_v57 = vmul.f32 1.442695, %v689_v55 }
 0xad7   :  { %v694_v58 = vsel %vm681_vm0, %v816_v56, 0.0 }
 0xad8   :  { %817 = vpow2.f32 %v692_v57  ;;  %695 = vadd.xlane.f32.xlu0 %v694_v58 }
 0xade   :  { %v818_v59 = vpop.eup %817 }
 0xadf   :  { %v697_v60 = vsel %vm681_vm0, %v818_v59, 0.0 }
 0xae0   :  { %698 = vadd.xlane.f32.xlu1 %v697_v60 }
 0xb4b   :  { %v696_v61 = vpop.xlane.xlu0 %695 }
 0xb4c   :  { %819 = vlog2.f32 %v696_v61 }
 0xb52   :  { %v820_v62 = vpop.eup %819 }
 0xb53   :  { %v701_v63 = vmul.f32 0.6931472, %v820_v62  ;;  %v699_v0 = vpop.xlane.xlu1 %698 }
 0xb54   :  { %821 = vlog2.f32 %v699_v0 }
 0xb55   :  { %v704_v1 = vsub.f32 %v688_v52, %v701_v63 }
 0xb57   :  { %706 = vst.msk [vmem:[%s998_s8] sm:$0xff] %vm681_vm0, %v704_v1 }
 0xb5a   :  { %v822_v2 = vpop.eup %821 }
 0xb5b   :  { %v703_v3 = vmul.f32 0.6931472, %v822_v2 }
 0xb5d   :  { %v705_v5 = vsub.f32 %v689_v55, %v703_v3 }
 0xb5f   :  { %707 = vst.msk [vmem:[%s998_s8 + $0x8] sm:$0xff] %vm681_vm0, %v705_v5 }

</bundles_post_ra>
